<compile_context>
chip_gen: v5e
topology: v5e:2x2
jax: 0.10.0
libtpu: 0.0.40
codegen_flags: <defaults>
</compile_context>

<pallas_src>
import math
import functools

import jax
import jax.numpy as jnp
from jax import lax
from jax.experimental import pallas as pl
from jax.experimental.pallas import tpu as pltpu


# ---------------------------------------------------------------------------
# Tiling helpers
# ---------------------------------------------------------------------------
_TM, _TN, _TK = 256, 512, 512            # matmul tile targets (8/128 aligned)
_TROWS = 512                             # layernorm row-tile target
_VMEM_LIMIT = 48 * 1024 * 1024           # fits v7x 64 MiB VMEM with headroom


def _round_up(x, m):
    return (x + m - 1) // m * m


def _pick_tile(dim, target):
    """Return (tile, padded_dim).  Small dims use one full-extent block."""
    if dim <= target:
        return dim, dim
    return target, _round_up(dim, target)


def _pad2(a, rows, cols):
    r, c = a.shape
    if r == rows and c == cols:
        return a
    return jnp.pad(a, ((0, rows - r), (0, cols - c)))


# ---------------------------------------------------------------------------
# In-kernel GELU.  Exact-erf GELU computed via the Abramowitz-Stegun 7.1.26
# polynomial (|err| < 1.5e-7) so it lowers with exp/mul/add on every TPU gen.
# TODO(synk): replace with lax.erf if/when Mosaic guarantees an erf lowering.
# ---------------------------------------------------------------------------
def _erf(z):
    a1, a2, a3, a4, a5 = (0.254829592, -0.284496736, 1.421413741,
                          -1.453152027, 1.061405429)
    p = 0.3275911
    sign = jnp.where(z < 0.0, -1.0, 1.0)
    az = jnp.abs(z)
    t = 1.0 / (1.0 + p * az)
    poly = ((((a5 * t + a4) * t + a3) * t + a2) * t + a1) * t
    return sign * (1.0 - poly * jnp.exp(-az * az))


def _gelu(x):
    return 0.5 * x * (1.0 + _erf(x * 0.7071067811865476))


# ---------------------------------------------------------------------------
# Fused tiled matmul:  y = act(x @ w + b) + residual
# ---------------------------------------------------------------------------
def _make_matmul_kernel(act, has_bias, has_res):
    def kernel(*refs):
        x_ref, w_ref = refs[0], refs[1]
        idx = 2
        b_ref = r_ref = None
        if has_bias:
            b_ref = refs[idx]
            idx += 1
        if has_res:
            r_ref = refs[idx]
            idx += 1
        o_ref = refs[idx]
        acc_ref = refs[idx + 1]

        @pl.when(pl.program_id(2) == 0)
        def _():
            acc_ref[...] = jnp.zeros_like(acc_ref)

        acc_ref[...] += jnp.dot(x_ref[...].astype(jnp.bfloat16),
                                w_ref[...].astype(jnp.bfloat16),
                                preferred_element_type=jnp.float32)

        @pl.when(pl.program_id(2) == pl.num_programs(2) - 1)
        def _():
            y = acc_ref[...]
            if has_bias:
                y = y + b_ref[...]
            if act == "gelu":
                y = _gelu(y)
            if has_res:
                y = y + r_ref[...]
            o_ref[...] = y

    return kernel


def linear(x, w, b=None, act="none", residual=None):
    """x: [M, K]; w: [K, N]; optional bias [N], residual [M, N] -> [M, N]."""
    M, K = x.shape
    N = w.shape[1]
    tm, Mp = _pick_tile(M, _TM)
    tn, Np = _pick_tile(N, _TN)
    tk, Kp = _pick_tile(K, _TK)

    inputs = [_pad2(x, Mp, Kp), _pad2(w, Kp, Np)]
    in_specs = [pl.BlockSpec((tm, tk), lambda i, j, k: (i, k)),
                pl.BlockSpec((tk, tn), lambda i, j, k: (k, j))]
    has_bias = b is not None
    if has_bias:
        bb = b if Np == N else jnp.pad(b, (0, Np - N))
        inputs.append(bb.reshape(1, Np))
        in_specs.append(pl.BlockSpec((1, tn), lambda i, j, k: (0, j)))
    has_res = residual is not None
    if has_res:
        inputs.append(_pad2(residual, Mp, Np))
        in_specs.append(pl.BlockSpec((tm, tn), lambda i, j, k: (i, j)))

    out = pl.pallas_call(
        _make_matmul_kernel(act, has_bias, has_res),
        grid=(Mp // tm, Np // tn, Kp // tk),
        in_specs=in_specs,
        out_specs=pl.BlockSpec((tm, tn), lambda i, j, k: (i, j)),
        out_shape=jax.ShapeDtypeStruct((Mp, Np), jnp.float32),
        scratch_shapes=[pltpu.VMEM((tm, tn), jnp.float32)],
        compiler_params=pltpu.CompilerParams(
            dimension_semantics=("parallel", "parallel", "arbitrary"),
            vmem_limit_bytes=_VMEM_LIMIT),
    )(*inputs)
    if Mp != M or Np != N:
        out = out[:M, :N]
    return out


# ---------------------------------------------------------------------------
# Fused LayerNorm(+gamma/beta) -> matmul -> bias -> GELU  (norm2 + MLP fc1)
# ---------------------------------------------------------------------------
def _make_ln_matmul_kernel(eps, act, has_bias):
    def kernel(x_ref, g_ref, beta_ref, w_ref, *rest):
        if has_bias:
            b_ref, o_ref = rest
        else:
            (o_ref,) = rest
        x = x_ref[...]
        mean = jnp.mean(x, axis=-1, keepdims=True)
        xc = x - mean
        var = jnp.mean(xc * xc, axis=-1, keepdims=True)
        xn = xc * lax.rsqrt(var + eps) * g_ref[...] + beta_ref[...]
        y = jnp.dot(xn.astype(jnp.bfloat16), w_ref[...].astype(jnp.bfloat16),
                    preferred_element_type=jnp.float32)
        if has_bias:
            y = y + b_ref[...]
        if act == "gelu":
            y = _gelu(y)
        o_ref[...] = y

    return kernel


def ln_linear(x, g, beta, w, b=None, act="none", eps=1e-5):
    """y = act(LayerNorm(x) @ w + b).  Full-K tiles (K = channel dim, small)."""
    M, K = x.shape
    N = w.shape[1]
    tm, Mp = _pick_tile(M, _TM)
    tn, Np = _pick_tile(N, _TN)

    xb = jnp.pad(x, ((0, Mp - M), (0, 0))) if Mp != M else x
    wb = jnp.pad(w, ((0, 0), (0, Np - N))) if Np != N else w
    inputs = [xb, g.reshape(1, K), beta.reshape(1, K), wb]
    in_specs = [pl.BlockSpec((tm, K), lambda i, j: (i, 0)),
                pl.BlockSpec((1, K), lambda i, j: (0, 0)),
                pl.BlockSpec((1, K), lambda i, j: (0, 0)),
                pl.BlockSpec((K, tn), lambda i, j: (0, j))]
    has_bias = b is not None
    if has_bias:
        bb = b if Np == N else jnp.pad(b, (0, Np - N))
        inputs.append(bb.reshape(1, Np))
        in_specs.append(pl.BlockSpec((1, tn), lambda i, j: (0, j)))

    out = pl.pallas_call(
        _make_ln_matmul_kernel(eps, act, has_bias),
        grid=(Mp // tm, Np // tn),
        in_specs=in_specs,
        out_specs=pl.BlockSpec((tm, tn), lambda i, j: (i, j)),
        out_shape=jax.ShapeDtypeStruct((Mp, Np), jnp.float32),
        compiler_params=pltpu.CompilerParams(
            dimension_semantics=("parallel", "parallel"),
            vmem_limit_bytes=_VMEM_LIMIT),
    )(*inputs)
    if Mp != M or Np != N:
        out = out[:M, :N]
    return out


# ---------------------------------------------------------------------------
# Row-tiled LayerNorm, optional fused GELU
# ---------------------------------------------------------------------------
def _make_ln_kernel(eps, act):
    def kernel(x_ref, g_ref, b_ref, o_ref):
        x = x_ref[...]
        mean = jnp.mean(x, axis=-1, keepdims=True)
        xc = x - mean
        var = jnp.mean(xc * xc, axis=-1, keepdims=True)
        y = xc * lax.rsqrt(var + eps) * g_ref[...] + b_ref[...]
        if act == "gelu":
            y = _gelu(y)
        o_ref[...] = y

    return kernel


def layernorm(x, g, b, eps=1e-5, act="none"):
    shp = x.shape
    C = shp[-1]
    x2 = x.reshape(-1, C)
    M = x2.shape[0]
    tm, Mp = _pick_tile(M, _TROWS)
    if Mp != M:
        x2 = jnp.pad(x2, ((0, Mp - M), (0, 0)))
    out = pl.pallas_call(
        _make_ln_kernel(eps, act),
        grid=(Mp // tm,),
        in_specs=[pl.BlockSpec((tm, C), lambda i: (i, 0)),
                  pl.BlockSpec((1, C), lambda i: (0, 0)),
                  pl.BlockSpec((1, C), lambda i: (0, 0))],
        out_specs=pl.BlockSpec((tm, C), lambda i: (i, 0)),
        out_shape=jax.ShapeDtypeStruct((Mp, C), jnp.float32),
        compiler_params=pltpu.CompilerParams(
            dimension_semantics=("parallel",), vmem_limit_bytes=_VMEM_LIMIT),
    )(x2, g.reshape(1, C), b.reshape(1, C))
    if Mp != M:
        out = out[:M]
    return out.reshape(shp)


# ---------------------------------------------------------------------------
# Batched multi-head attention (heads concatenated on the lane dim)
# ---------------------------------------------------------------------------
def _make_mha_kernel(num_heads, scale, res_mode):
    def kernel(*refs):
        if res_mode == "external":
            q_ref, k_ref, v_ref, r_ref, o_ref = refs
        else:
            q_ref, k_ref, v_ref, o_ref = refs
            r_ref = None
        q = q_ref[...]
        k = k_ref[...]
        v = v_ref[...]
        dq = q.shape[-1] // num_heads
        dv = v.shape[-1] // num_heads
        outs = []
        for h in range(num_heads):                       # static, small
            qh = q[:, :, h * dq:(h + 1) * dq].astype(jnp.bfloat16)
            kh = k[:, :, h * dq:(h + 1) * dq].astype(jnp.bfloat16)
            vh = v[:, :, h * dv:(h + 1) * dv]
            s = jnp.einsum('gqd,gkd->gqk', qh, kh,
                           preferred_element_type=jnp.float32) * scale
            s = s - jnp.max(s, axis=-1, keepdims=True)
            p = jnp.exp(s)
            p = p * pl.reciprocal(jnp.sum(p, axis=-1, keepdims=True),
                                  approx=True)
            outs.append(jnp.einsum('gqk,gkd->gqd', p.astype(jnp.bfloat16),
                                   vh.astype(jnp.bfloat16),
                                   preferred_element_type=jnp.float32))
        out = outs[0] if num_heads == 1 else jnp.concatenate(outs, axis=-1)
        if res_mode == "external":
            out = out + r_ref[...]
        elif res_mode == "v":
            out = out + v
        o_ref[...] = out

    return kernel


def mha(q, k, v, num_heads, scale, residual=None, residual_is_v=False):
    """q, k: [G, L, Dq]; v: [G, L, Dv] (heads concat) -> [G, L, Dv]."""
    G, L, Dq = q.shape
    Dv = v.shape[-1]
    Gt = G if G <= 64 else 32                 # batch groups per grid step
    Gp = _round_up(G, Gt)
    if Gp != G:
        pads = ((0, Gp - G), (0, 0), (0, 0))
        q = jnp.pad(q, pads)
        k = jnp.pad(k, pads)
        v = jnp.pad(v, pads)
        if residual is not None:
            residual = jnp.pad(residual, pads)
    if residual_is_v:
        res_mode = "v"
    elif residual is not None:
        res_mode = "external"
    else:
        res_mode = "none"

    inputs = [q, k, v]
    in_specs = [pl.BlockSpec((Gt, L, Dq), lambda g: (g, 0, 0)),
                pl.BlockSpec((Gt, L, Dq), lambda g: (g, 0, 0)),
                pl.BlockSpec((Gt, L, Dv), lambda g: (g, 0, 0))]
    if res_mode == "external":
        inputs.append(residual)
        in_specs.append(pl.BlockSpec((Gt, L, Dv), lambda g: (g, 0, 0)))

    out = pl.pallas_call(
        _make_mha_kernel(num_heads, scale, res_mode),
        grid=(Gp // Gt,),
        in_specs=in_specs,
        out_specs=pl.BlockSpec((Gt, L, Dv), lambda g: (g, 0, 0)),
        out_shape=jax.ShapeDtypeStruct((Gp, L, Dv), jnp.float32),
        compiler_params=pltpu.CompilerParams(
            dimension_semantics=("parallel",), vmem_limit_bytes=_VMEM_LIMIT),
    )(*inputs)
    return out[:G] if Gp != G else out


# ---------------------------------------------------------------------------
# PosCNN depthwise 3x3 conv + bias + residual (single padded-image read)
# ---------------------------------------------------------------------------
def _dwconv_kernel(xp_ref, x_ref, w_ref, b_ref, o_ref, *, H, W):
    acc = x_ref[0] + b_ref[0, 0]                 # residual (s==1 path) + bias
    for dh in range(3):
        for dw in range(3):
            acc = acc + xp_ref[0, dh:dh + H, dw:dw + W, :] * w_ref[dh * 3 + dw, 0]
    o_ref[0] = acc


def dwconv_pos(x_bhwc, w33c, bias):
    """Depthwise 3x3 conv (stride 1, pad 1, groups=C) + residual. NHWC."""
    B, H, W, C = x_bhwc.shape
    xp = jnp.pad(x_bhwc, ((0, 0), (1, 1), (1, 1), (0, 0)))
    wt = w33c.reshape(9, 1, 1, C)
    bb = bias.reshape(1, 1, 1, C)
    return pl.pallas_call(
        functools.partial(_dwconv_kernel, H=H, W=W),
        grid=(B,),
        in_specs=[pl.BlockSpec((1, H + 2, W + 2, C), lambda b: (b, 0, 0, 0)),
                  pl.BlockSpec((1, H, W, C), lambda b: (b, 0, 0, 0)),
                  pl.BlockSpec((9, 1, 1, C), lambda b: (0, 0, 0, 0)),
                  pl.BlockSpec((1, 1, 1, C), lambda b: (0, 0, 0, 0))],
        out_specs=pl.BlockSpec((1, H, W, C), lambda b: (b, 0, 0, 0)),
        out_shape=jax.ShapeDtypeStruct((B, H, W, C), jnp.float32),
        compiler_params=pltpu.CompilerParams(dimension_semantics=("parallel",)),
    )(xp, x_bhwc, wt, bb)


# ---------------------------------------------------------------------------
# Model glue (plain JAX: im2col, window partition/reverse, reshapes)
# ---------------------------------------------------------------------------
def conv2d_via_matmul(x_nchw, w, b, stride, padding):
    """Strided conv (PatchEmbed.proj) as im2col + fused Pallas matmul."""
    B, Cin, Hin, Win = x_nchw.shape
    Cout, _, kh, kw = w.shape
    xp = jnp.pad(x_nchw, ((0, 0), (0, 0), (padding, padding), (padding, padding)))
    Hout = (Hin + 2 * padding - kh) // stride + 1
    Wout = (Win + 2 * padding - kw) // stride + 1
    cols = []
    for dh in range(kh):
        for dw in range(kw):
            cols.append(xp[:, :, dh:dh + stride * Hout:stride,
                           dw:dw + stride * Wout:stride])
    patches = jnp.stack(cols, axis=1)                 # [B, kh*kw, Cin, Ho, Wo]
    patches = patches.transpose(0, 3, 4, 2, 1)        # [B, Ho, Wo, Cin, kh*kw]
    patches = patches.reshape(B * Hout * Wout, Cin * kh * kw)
    wmat = w.reshape(Cout, Cin * kh * kw).T           # [Cin*kh*kw, Cout]
    y = linear(patches, wmat, b)                      # fused bias epilogue
    return y.reshape(B, Hout, Wout, Cout), Hout, Wout


def separable_attention(x_win, x_tok, H, W, blk, num_heads, ws):
    """x_win: [B, win_num, ws*ws+1, C] (norm1'ed); x_tok: [B, H*W, C] residual."""
    B, win_num, L, C = x_win.shape
    nh = num_heads
    hd = C // nh
    scale = hd ** -0.5
    h_group, w_group = math.ceil(H / ws), math.ceil(W / ws)
    ws2 = ws * ws
    G = B * win_num

    # ---- DSA: attention within each window (incl. window token) ----
    xw = x_win.reshape(G, L, C)
    qkv = linear(xw.reshape(G * L, C), blk["dsa_qkv_w"])      # qkv_bias=False
    qkv = qkv.reshape(G, L, 3 * C)
    q, k, v = qkv[:, :, :C], qkv[:, :, C:2 * C], qkv[:, :, 2 * C:]
    attn_out = mha(q, k, v, nh, scale, residual=xw)           # + x_win fused

    win_tokens = attn_out[:, 0, :]                            # [G, C]
    attn_x = attn_out[:, 1:, :]                               # [G, ws2, C]

    # ---- PSA: attention across windows via window tokens ----
    wt = layernorm(win_tokens, blk["wt_ln_g"], blk["wt_ln_b"], act="gelu")
    qk = linear(wt, blk["psa_qk_w"])
    pq = qk[:, :C].reshape(B, win_num, C)
    pk = qk[:, C:].reshape(B, win_num, C)
    pv = attn_x.reshape(B, win_num, ws2, nh, hd)
    pv = pv.transpose(0, 1, 3, 2, 4).reshape(B, win_num, nh * ws2 * hd)
    psa = mha(pq, pk, pv, nh, scale, residual_is_v=True)      # + attn_x fused

    o2 = psa.reshape(B, win_num, nh, ws2, hd)
    o2 = o2.transpose(0, 1, 3, 2, 4).reshape(B, win_num, ws2, C)

    # ---- window reverse ----
    o2 = o2.reshape(B, h_group, w_group, ws, ws, C)
    o2 = o2.transpose(0, 1, 3, 2, 4, 5).reshape(B, h_group * ws, w_group * ws, C)
    if h_group * ws > H or w_group * ws > W:
        o2 = o2[:, :H, :W, :]
    o2 = o2.reshape(B * H * W, C)

    # proj with fused bias + block residual (x = x + attn(...))
    out = linear(o2, blk["proj_w"], blk["proj_b"],
                 residual=x_tok.reshape(B * H * W, C))
    return out.reshape(B, H * W, C)


def sepvit_block(x, H, W, blk, num_heads, ws):
    B, N, C = x.shape
    attn_x = x.reshape(B, H, W, C)
    pad_r = (ws - W % ws) % ws
    pad_b = (ws - H % ws) % ws
    if pad_r > 0 or pad_b > 0:
        attn_x = jnp.pad(attn_x, ((0, 0), (0, pad_b), (0, pad_r), (0, 0)))
    h_group, w_group = math.ceil(H / ws), math.ceil(W / ws)
    attn_x = attn_x.reshape(B, h_group, ws, w_group, ws, C)
    attn_x = attn_x.transpose(0, 1, 3, 2, 4, 5).reshape(B, h_group * w_group,
                                                        ws * ws, C)
    win_tokens = jnp.zeros((B, h_group * w_group, 1, C), jnp.float32)
    attn_x = jnp.concatenate([win_tokens, attn_x], axis=2)

    normed = layernorm(attn_x, blk["norm1_g"], blk["norm1_b"])
    x = separable_attention(normed, x, H, W, blk, num_heads, ws)  # residual fused

    # MLP: fused norm2+fc1+GELU, then fc2 with fused bias + residual
    h = ln_linear(x.reshape(B * N, C), blk["norm2_g"], blk["norm2_b"],
                  blk["fc1_w"], blk["fc1_b"], act="gelu")
    x = linear(h, blk["fc2_w"], blk["fc2_b"],
               residual=x.reshape(B * N, C)).reshape(B, N, C)
    return x


def sepvit_forward(x_nchw, params, cfg):
    B = x_nchw.shape[0]
    outputs = []
    x = x_nchw
    for i, st_c in enumerate(cfg["stages"]):
        st_p = params["stages"][i]
        # PatchEmbed: conv (fused matmul) + LayerNorm
        # TODO(synk): PatchEmbed LayerNorm could be fused into the conv matmul
        # epilogue when Cout <= one N tile; kept as a separate tiled LN here.
        y_bhwc, H, W = conv2d_via_matmul(x, st_p["pe_w"], st_p["pe_b"],
                                         stride=st_c["stride"], padding=st_c["pad"])
        C = y_bhwc.shape[-1]
        xt = layernorm(y_bhwc.reshape(B, H * W, C), st_p["pe_ln_g"], st_p["pe_ln_b"])
        # blocks (+ PosCNN after the first block of each stage)
        for j, blk in enumerate(st_p["blocks"]):
            xt = sepvit_block(xt, H, W, blk, st_c["num_heads"], st_c["ws"][j])
            if j == 0:
                xt = dwconv_pos(xt.reshape(B, H, W, C),
                                st_p["pos_w"], st_p["pos_b"]).reshape(B, H * W, C)
        out = xt.reshape(B, H, W, C).transpose(0, 3, 1, 2)   # back to NCHW
        outputs.append(out)
        x = out
    return outputs


# ---------------------------------------------------------------------------
# Deterministic parameter construction
# ---------------------------------------------------------------------------
class KeyGen:
    def __init__(self, key):
        self.key = key

    def __call__(self):
        self.key, k = jax.random.split(self.key)
        return k


def trunc_normal(key, shape, std=0.02):
    return std * jax.random.truncated_normal(key, -2.0, 2.0, shape, jnp.float32)


def make_params(kg, cfg, in_chans):
    stages = []
    in_c = in_chans
    for st in cfg["stages"]:
        dim, k = st["dim"], st["k"]
        fan_out = k * k * dim
        pe_w = jax.random.normal(kg(), (dim, in_c, k, k), jnp.float32) * math.sqrt(2.0 / fan_out)
        blocks = []
        for _ in st["ws"]:
            hidden = dim * st["mlp_ratio"]
            blocks.append(dict(
                norm1_g=jnp.ones((dim,), jnp.float32), norm1_b=jnp.zeros((dim,), jnp.float32),
                dsa_qkv_w=trunc_normal(kg(), (dim, 3 * dim)),
                wt_ln_g=jnp.ones((dim,), jnp.float32), wt_ln_b=jnp.zeros((dim,), jnp.float32),
                psa_qk_w=trunc_normal(kg(), (dim, 2 * dim)),
                proj_w=trunc_normal(kg(), (dim, dim)), proj_b=jnp.zeros((dim,), jnp.float32),
                norm2_g=jnp.ones((dim,), jnp.float32), norm2_b=jnp.zeros((dim,), jnp.float32),
                fc1_w=trunc_normal(kg(), (dim, hidden)), fc1_b=jnp.zeros((hidden,), jnp.float32),
                fc2_w=trunc_normal(kg(), (hidden, dim)), fc2_b=jnp.zeros((dim,), jnp.float32),
            ))
        pos_w = jax.random.normal(kg(), (3, 3, dim), jnp.float32) * math.sqrt(2.0 / 9.0)
        stages.append(dict(
            pe_w=pe_w, pe_b=jnp.zeros((dim,), jnp.float32),
            pe_ln_g=jnp.ones((dim,), jnp.float32), pe_ln_b=jnp.zeros((dim,), jnp.float32),
            blocks=blocks,
            pos_w=pos_w, pos_b=jnp.zeros((dim,), jnp.float32),
        ))
        in_c = dim
    return dict(stages=stages)


# ---------------------------------------------------------------------------
if __name__ == "__main__":
    # Small SepViT config: 2 stages, depths=[1,1], ws=[[2],[2]]
    cfg = dict(stages=[
        dict(dim=32, num_heads=1, mlp_ratio=2, ws=[2], k=4, stride=4, pad=0),
        dict(dim=64, num_heads=2, mlp_ratio=2, ws=[2], k=3, stride=2, pad=1),
    ])
    B, in_chans, img = 2, 4, 16

    root = jax.random.PRNGKey(0)
    k_in, k_par = jax.random.split(root)
    x = jax.random.normal(k_in, (B, in_chans, img, img), jnp.float32)  # NCHW like torch
    params = make_params(KeyGen(k_par), cfg, in_chans)

    outputs = sepvit_forward(x, params, cfg)
    for o in outputs:
        jax.block_until_ready(o)
    assert outputs[0].shape == (B, 32, 4, 4)
    assert outputs[1].shape == (B, 64, 2, 2)
    print("KERNEL_OK")
</pallas_src>

<mosaic_0001>
module attributes {stable_mosaic.version = 11 : i64} {
  func.func @kernel(%arg0: i32, %arg1: i32, %arg2: i32, %arg3: memref<32x64xf32, #tpu.memory_space<vmem>>, %arg4: memref<64x32xf32, #tpu.memory_space<vmem>>, %arg5: memref<1x32xf32, #tpu.memory_space<vmem>>, %arg6: memref<32x32xf32, #tpu.memory_space<vmem>>, %arg7: memref<32x32xf32, #tpu.memory_space<vmem>>) attributes {dimension_semantics = [#tpu.dimension_semantics<parallel>, #tpu.dimension_semantics<parallel>, #tpu.dimension_semantics<arbitrary>], iteration_bounds = array<i64: 1, 1, 1>, scalar_prefetch = 0 : i64, scratch_operands = 1 : i64, tpu.core_type = #tpu.core_type<tc>, window_params = [{transform_indices = @transform_0, window_bounds = array<i64: 32, 64>}, {transform_indices = @transform_1, window_bounds = array<i64: 64, 32>}, {transform_indices = @transform_2, window_bounds = array<i64: 1, 32>}, {transform_indices = @transform_3, window_bounds = array<i64: 32, 32>}]} {
    %c0_i32 = arith.constant 0 : i32
    %0 = arith.cmpi eq, %arg2, %c0_i32 : i32
    %1 = arith.extui %0 : i1 to i32
    %c0_i32_0 = arith.constant 0 : i32
    %2 = arith.cmpi ne, %1, %c0_i32_0 : i32
    scf.if %2 {
      %cst_10 = arith.constant 0.000000e+00 : f32
      %14 = vector.broadcast %cst_10 : f32 to vector<32x32xf32>
      %c0_11 = arith.constant 0 : index
      %c0_12 = arith.constant 0 : index
      %15 = vector.load %arg7[%c0_11, %c0_12] : memref<32x32xf32, #tpu.memory_space<vmem>>, vector<32x32xf32>
      tpu.vector_store %arg7[%c0_11, %c0_12], %14 {strides = array<i32>} : memref<32x32xf32, #tpu.memory_space<vmem>>, vector<32x32xf32>,
    } else {
    }
    %c0 = arith.constant 0 : index
    %c0_1 = arith.constant 0 : index
    %3 = vector.load %arg7[%c0, %c0_1] : memref<32x32xf32, #tpu.memory_space<vmem>>, vector<32x32xf32>
    %c0_2 = arith.constant 0 : index
    %c0_3 = arith.constant 0 : index
    %4 = vector.load %arg3[%c0_2, %c0_3] : memref<32x64xf32, #tpu.memory_space<vmem>>, vector<32x64xf32>
    %5 = arith.truncf %4 : vector<32x64xf32> to vector<32x64xbf16>
    %c0_4 = arith.constant 0 : index
    %c0_5 = arith.constant 0 : index
    %6 = vector.load %arg4[%c0_4, %c0_5] : memref<64x32xf32, #tpu.memory_space<vmem>>, vector<64x32xf32>
    %7 = arith.truncf %6 : vector<64x32xf32> to vector<64x32xbf16>
    %cst = arith.constant dense<0.000000e+00> : vector<32x32xf32>
    %8 = tpu.matmul %5, %7, %cst {dimension_numbers = #tpu.dot_dimension_numbers<[1], [0], [0], [1], [0, 0, 1, 1], [], []>} : vector<32x64xbf16>, vector<64x32xbf16>, vector<32x32xf32> -> vector<32x32xf32>
    %9 = arith.addf %3, %8 : vector<32x32xf32>
    %c0_6 = arith.constant 0 : index
    %c0_7 = arith.constant 0 : index
    %10 = vector.load %arg7[%c0_6, %c0_7] : memref<32x32xf32, #tpu.memory_space<vmem>>, vector<32x32xf32>
    tpu.vector_store %arg7[%c0_6, %c0_7], %9 {strides = array<i32>} : memref<32x32xf32, #tpu.memory_space<vmem>>, vector<32x32xf32>,
    %c0_i32_8 = arith.constant 0 : i32
    %11 = arith.cmpi eq, %arg2, %c0_i32_8 : i32
    %12 = arith.extui %11 : i1 to i32
    %c0_i32_9 = arith.constant 0 : i32
    %13 = arith.cmpi ne, %12, %c0_i32_9 : i32
    scf.if %13 {
      %c0_10 = arith.constant 0 : index
      %c0_11 = arith.constant 0 : index
      %14 = vector.load %arg7[%c0_10, %c0_11] : memref<32x32xf32, #tpu.memory_space<vmem>>, vector<32x32xf32>
      %c0_12 = arith.constant 0 : index
      %c0_13 = arith.constant 0 : index
      %15 = vector.load %arg5[%c0_12, %c0_13] : memref<1x32xf32, #tpu.memory_space<vmem>>, vector<1x32xf32>
      %16 = vector.broadcast %15 : vector<1x32xf32> to vector<32x32xf32>
      %17 = arith.addf %14, %16 : vector<32x32xf32>
      %c0_14 = arith.constant 0 : index
      %c0_15 = arith.constant 0 : index
      %18 = vector.load %arg6[%c0_14, %c0_15] : memref<32x32xf32, #tpu.memory_space<vmem>>, vector<32x32xf32>
      tpu.vector_store %arg6[%c0_14, %c0_15], %17 {strides = array<i32>} : memref<32x32xf32, #tpu.memory_space<vmem>>, vector<32x32xf32>,
    } else {
    }
    return
  }
  func.func @transform_0(%arg0: i32, %arg1: i32, %arg2: i32) -> (i32, i32) {
    %c0_i32 = arith.constant 0 : i32
    return %arg0, %arg2 : i32, i32
  }
  func.func @transform_1(%arg0: i32, %arg1: i32, %arg2: i32) -> (i32, i32) {
    %c0_i32 = arith.constant 0 : i32
    return %arg2, %arg1 : i32, i32
  }
  func.func @transform_2(%arg0: i32, %arg1: i32, %arg2: i32) -> (i32, i32) {
    %c0_i32 = arith.constant 0 : i32
    %c0_i32_0 = arith.constant 0 : i32
    return %c0_i32, %arg1 : i32, i32
  }
  func.func @transform_3(%arg0: i32, %arg1: i32, %arg2: i32) -> (i32, i32) {
    %c0_i32 = arith.constant 0 : i32
    return %arg0, %arg1 : i32, i32
  }
}

</mosaic_0001>

<bundles_post_ra>
// kernel: tpu_custom_call.1
= control target key start
LH: loop header
LB: loop body
LE: loop exit
PB: predicated region body
PF: predicated region fallthrough
CT: control target
= control target key end

     0   :  { %vm20_vm0 = vcmask 261120   ;;  %v156_v5 = vmov 0.0   ;;  %s234_s0 = inlined_call_operand.vmem [shape: f32[32,64], index: 0, kind: input, shape index: {}]   ;;  %s235_s1 = inlined_call_operand.vmem [shape: f32[64,32], index: 1, kind: input, shape index: {}]   ;;  %s236_s2 = inlined_call_operand.vmem [shape: f32[1,32], index: 2, kind: input, shape index: {}]   ;;  %s237_s3 = inlined_call_operand.hbm [shape: f32[32,32], index: 3, kind: output, shape index: {}]  }
   0x1   :  { %v41_v0 = vld [vmem:[%s235_s1 + $0x30] sm:$0xff]  ;;  %v42_v1 = vld [vmem:[%s235_s1 + $0x38] sm:$0xff]  ;;  %v39_v2 = vld [vmem:[%s235_s1 + $0x20] sm:$0xff]  ;;  %21 = vst.msk [vmem:[#allocation2] sm:$0xff] %vm20_vm0, %v156_v5 }
   0x2   :  { %v46_v3 = vpack.c.bf16 %v42_v1, %v41_v0  ;;  %v40_v4 = vld [vmem:[%s235_s1 + $0x28] sm:$0xff]  ;;  %22 = vst.msk [vmem:[#allocation2 + $0x8] sm:$0xff] %vm20_vm0, %v156_v5  ;;  %v37_v7 = vld [vmem:[%s235_s1 + $0x10] sm:$0xff]  ;;  %v38_v8 = vld [vmem:[%s235_s1 + $0x18] sm:$0xff] }
   0x3   :  { %v45_v6 = vpack.c.bf16 %v40_v4, %v39_v2  ;;  %23 = vst.msk [vmem:[#allocation2 + $0x10] sm:$0xff] %vm20_vm0, %v156_v5 }
   0x4   :  { %58 = vmatpush.bf16.msra.mxu0 %v46_v3  ;;  %121 = vmatpush.bf16.msra.mxu1 %v46_v3  ;;  %24 = vst.msk [vmem:[#allocation2 + $0x18] sm:$0xff] %vm20_vm0, %v156_v5 }
   0x5   :  { %8 = vsyncpa [#allocation4], 0  ;;  %v44_v9 = vpack.c.bf16 %v38_v8, %v37_v7  ;;  %v35_v10 = vld [vmem:[%s235_s1] sm:$0xff]  ;;  %v36_v11 = vld [vmem:[%s235_s1 + $0x8] sm:$0xff]  ;;  %vm47_vm1 = vcmask 523264   ;;  %s157_s9 = smov [#allocation3]  }
   0x6   :  { %v29_v12 = vld [vmem:[%s234_s0] sm:$0xff]  ;;  %v43_v13 = vpack.c.bf16 %v36_v11, %v35_v10  ;;  %v30_v14 = vld [vmem:[%s234_s0 + $0x8] sm:$0xff]  ;;  %v31_v15 = vld [vmem:[%s234_s0 + $0x10] sm:$0xff]  ;;  %s105_s10 = sshll.u32 %s157_s9, 4  ;;  %s107_s12 = sshll.u32 %s237_s3, 4  ;;  %s106_s10 = int_to_ptr.vmem [resolvable:$true] %s105_s10  ;;  %s108_s12 = int_to_ptr.hbm [resolvable:$true] %s107_s12 }
   0x7   :  { %v32_v16 = vld [vmem:[%s234_s0 + $0x18] sm:$0xff]  ;;  %v33_v17 = vpack.c.bf16 %v30_v14, %v29_v12  ;;  %v129_v27 = vld [vmem:[%s236_s2] ss:$0 sm:$0xff]  ;;  %s158_s13 = smov 128   ;;  %s159_s14 = smov 8  }
   0x8   :  { %59 = vmatpush.bf16.msra.mxu0 %v45_v6  ;;  %122 = vmatpush.bf16.msra.mxu1 %v45_v6  ;;  %v34_v18 = vpack.c.bf16 %v32_v16, %v31_v15  ;;  %v25_v19 = vld [vmem:[#allocation2] sm:$0xff] }
   0x9   :  { %v26_v25 = vld [vmem:[#allocation2 + $0x8] sm:$0xff] }
   0xa   :  { %v27_v20 = vld [vmem:[#allocation2 + $0x10] sm:$0xff] }
   0xb   :  { %v28_v26 = vld [vmem:[#allocation2 + $0x18] sm:$0xff] }
   0xc   :  { %60 = vmatpush.bf16.msra.mxu0 %v44_v9  ;;  %123 = vmatpush.bf16.msra.mxu1 %v44_v9 }
  0x10   :  { %61 = vmatpush.bf16.msra.mxu0 %v43_v13  ;;  %124 = vmatpush.bf16.msra.mxu1 %v43_v13 }
  0x13   :  { %119 = vmatmul.msk.bf16.vlgmr.msra.gmra.mxu0 %vm47_vm1, %v33_v17  ;;  %120 = vmatmul.msk.bf16.vlgmr.msra.gmra.mxu1 %vm47_vm1, %v34_v18 }
  0x90   :  { %v63_v21 = vpop.f32.mrf.mxu0  ;;  %v68_v22 = vpop.f32.mrf.mxu1 }
  0x91   :  { %v73_v23 = vadd.f32 %v63_v21, %v25_v19  ;;  %v75_v24 = vadd.f32 %v68_v22, %v27_v20 }
  0x93   :  { %78 = vst.msk [vmem:[#allocation2] sm:$0xff] %vm20_vm0, %v73_v23 }
  0x94   :  { %80 = vst.msk [vmem:[#allocation2 + $0x10] sm:$0xff] %vm20_vm0, %v75_v24 }
  0x98   :  { %v65_v28 = vpop.f32.mrf.mxu0  ;;  %v70_v29 = vpop.f32.mrf.mxu1 }
  0x99   :  { %v74_v30 = vadd.f32 %v65_v28, %v26_v25  ;;  %v76_v31 = vadd.f32 %v70_v29, %v28_v26 }
  0x9a   :  { %v85_v32 = vld [vmem:[#allocation2] sm:$0xff] }
  0x9b   :  { %79 = vst.msk [vmem:[#allocation2 + $0x8] sm:$0xff] %vm20_vm0, %v74_v30  ;;  %v87_v33 = vld [vmem:[#allocation2 + $0x10] sm:$0xff]  ;;  %v93_v34 = vadd.f32 %v129_v27, %v85_v32 }
  0x9c   :  { %81 = vst.msk [vmem:[#allocation2 + $0x18] sm:$0xff] %vm20_vm0, %v76_v31  ;;  %v95_v35 = vadd.f32 %v129_v27, %v87_v33 }
  0x9d   :  { %97 = vst.msk [vmem:[#allocation3] sm:$0xff] %vm20_vm0, %v93_v34 }
  0x9e   :  { %99 = vst.msk [vmem:[#allocation3 + $0x10] sm:$0xff] %vm20_vm0, %v95_v35 }
  0xa2   :  { %v86_v36 = vld [vmem:[#allocation2 + $0x8] sm:$0xff] }
  0xa3   :  { %v88_v37 = vld [vmem:[#allocation2 + $0x18] sm:$0xff]  ;;  %v94_v38 = vadd.f32 %v129_v27, %v86_v36 }
  0xa4   :  { %v96_v39 = vadd.f32 %v129_v27, %v88_v37 }
  0xa5   :  { %98 = vst.msk [vmem:[#allocation3 + $0x8] sm:$0xff] %vm20_vm0, %v94_v38 }
  0xa6   :  { %100 = vst.msk [vmem:[#allocation3 + $0x18] sm:$0xff] %vm20_vm0, %v96_v39 }
  0xa7   :  { %113 = dma.vmem_to_hbm [thread:$0]  %s106_s10, 512, %s108_s12, [#allocation4], %s158_s13, %s158_s13, %s159_s14  }
  0xa8   :  { %154 = dma.done.wait [#allocation4], 512  }
  0xa9   :  { %155 = vsyncadd [#allocation4], 4294966784 }
  0xaa   :  { %118 = vsyncpa [#allocation4], 1 }

</bundles_post_ra>
